<compile_context>
chip_gen: v6e
topology: v6e:2x2x1
jax: 0.10.0
libtpu: 0.0.40
codegen_flags: <defaults>
</compile_context>

<pallas_src>
import functools

import jax
import jax.numpy as jnp
from jax.experimental import pallas as pl
from jax.experimental.pallas import tpu as pltpu


def _linear_nchw_kernel(x_ref, w_ref, b_ref, o_ref):
    # x_ref: (C_in, T_HW), w_ref: (C_out, C_in), b_ref: (C_out, 1),
    # o_ref: (C_out, T_HW).  Single MXU matmul + bias broadcast over lanes.
    acc = jnp.dot(w_ref[...], x_ref[...], preferred_element_type=jnp.float32)
    acc = acc + b_ref[...].astype(jnp.float32)
    o_ref[...] = acc.astype(o_ref.dtype)


def _pick_tile_hw(hw, c_in, c_out, itemsize, tile_budget_bytes=16 * 1024 * 1024):
    """Pick a large, lane-friendly HW tile.

    Full extent if it fits the budget; otherwise the largest multiple of 128
    (bounded by the VMEM tile budget) that divides HW; otherwise the budget cap
    itself, with the ragged tail handled by Pallas's masked boundary writes.
    """
    # Per-lane VMEM cost: double-buffered x tile + double-buffered out tile.
    per_lane = 2 * (c_in + c_out) * itemsize
    max_tile = max(128, tile_budget_bytes // max(per_lane, 1))
    max_tile = min(max_tile, 1 << 14)  # keep per-step DMA sizes reasonable
    if hw <= max_tile:
        return hw
    t = (max_tile // 128) * 128
    cap = t
    while t >= 128:
        if hw % t == 0:
            return t
        t -= 128
    return cap


@functools.partial(jax.jit, static_argnames=("tile_budget_bytes",))
def linear_nchw(x, weight, bias, tile_budget_bytes=16 * 1024 * 1024):
    """x: (N, C_in, H, W). weight: (C_out, C_in). bias: (C_out,).

    Returns (N, C_out, H, W); identical semantics to the PyTorch module
    (permute -> nn.Linear over channels -> permute back).
    """
    n, c_in, h, w = x.shape
    c_out = weight.shape[0]
    hw = h * w
    itemsize = jnp.dtype(x.dtype).itemsize

    tile_hw = _pick_tile_hw(hw, c_in, c_out, itemsize, tile_budget_bytes)
    n_hw_tiles = pl.cdiv(hw, tile_hw)

    # Free reshapes — no transposes, no padding, no extra HBM traffic.
    x3d = x.reshape(n, c_in, hw)
    b2d = bias.reshape(c_out, 1)

    # VMEM footprint: double-buffered x / out tiles + resident weight + bias,
    # plus ~2x headroom for compiler scratch.
    # TODO(synk): for very large C_in*C_out (weight not fitting v7x's 64 MiB
    # VMEM) add C_out / C_in grid axes with an f32 accumulator scratch.
    w_itemsize = jnp.dtype(weight.dtype).itemsize
    est_bytes = (2 * (c_in + c_out) * tile_hw * itemsize
                 + (c_out * c_in + c_out) * w_itemsize)
    vmem_limit = int(min(64 * 1024 * 1024,
                         max(32 * 1024 * 1024, 2 * est_bytes)))

    out3d = pl.pallas_call(
        _linear_nchw_kernel,
        out_shape=jax.ShapeDtypeStruct((n, c_out, hw), x.dtype),
        grid_spec=pltpu.PrefetchScalarGridSpec(
            num_scalar_prefetch=0,
            grid=(n, n_hw_tiles),
            in_specs=[
                # x block: (1, C_in, T_HW); leading batch dim squeezed.
                pl.BlockSpec((None, c_in, tile_hw), lambda b, i: (b, 0, i)),
                # Weight kept resident, untransposed (C_out, C_in).
                pl.BlockSpec((c_out, c_in), lambda b, i: (0, 0)),
                # Bias (C_out, 1), resident.
                pl.BlockSpec((c_out, 1), lambda b, i: (0, 0)),
            ],
            out_specs=pl.BlockSpec((None, c_out, tile_hw), lambda b, i: (b, 0, i)),
        ),
        compiler_params=pltpu.CompilerParams(
            dimension_semantics=("parallel", "parallel"),
            vmem_limit_bytes=vmem_limit,
        ),
    )(x3d, weight, b2d)

    return out3d.reshape(n, c_out, h, w)


if __name__ == "__main__":
    # Small shapes consistent with the module's forward (NCHW input).
    N, C_IN, H, W = 2, 4, 16, 16
    C_OUT = 8

    key = jax.random.PRNGKey(0)
    kx, kw, kb = jax.random.split(key, 3)

    x = jax.random.normal(kx, (N, C_IN, H, W), dtype=jnp.float32)

    # Deterministic parameter init mimicking nn.Linear default
    # (uniform in [-1/sqrt(in_features), 1/sqrt(in_features)]).
    bound = 1.0 / jnp.sqrt(jnp.float32(C_IN))
    weight = jax.random.uniform(kw, (C_OUT, C_IN), jnp.float32, -bound, bound)
    bias = jax.random.uniform(kb, (C_OUT,), jnp.float32, -bound, bound)

    out = linear_nchw(x, weight, bias)
    jax.block_until_ready(out)

    # Reference check in plain JAX (same math as the PyTorch module).
    ref = jnp.einsum("nchw,oc->nohw", x, weight) + bias[None, :, None, None]
    assert out.shape == (N, C_OUT, H, W)
    assert jnp.allclose(out, ref, atol=1e-5, rtol=1e-5)

    print("KERNEL_OK")
</pallas_src>

<mosaic_0001>
module attributes {stable_mosaic.version = 11 : i64} {
  func.func @_linear_nchw_kernel(%arg0: i32, %arg1: i32, %arg2: memref<1x4x256xf32, #tpu.memory_space<vmem>>, %arg3: memref<8x4xf32, #tpu.memory_space<vmem>>, %arg4: memref<8x1xf32, #tpu.memory_space<vmem>>, %arg5: memref<1x8x256xf32, #tpu.memory_space<vmem>>) attributes {dimension_semantics = [#tpu.dimension_semantics<parallel>, #tpu.dimension_semantics<parallel>], iteration_bounds = array<i64: 2, 1>, scalar_prefetch = 0 : i64, scratch_operands = 0 : i64, tpu.core_type = #tpu.core_type<tc>, window_params = [{transform_indices = @transform_0, window_bounds = array<i64: 1, 4, 256>}, {pipeline_mode = #tpu.pipeline_mode<synchronous>, transform_indices = @transform_1, window_bounds = array<i64: 8, 4>}, {pipeline_mode = #tpu.pipeline_mode<synchronous>, transform_indices = @transform_2, window_bounds = array<i64: 8, 1>}, {transform_indices = @transform_3, window_bounds = array<i64: 1, 8, 256>}]} {
    %c0 = arith.constant 0 : index
    %c0_0 = arith.constant 0 : index
    %0 = vector.load %arg3[%c0, %c0_0] : memref<8x4xf32, #tpu.memory_space<vmem>>, vector<8x4xf32>
    %c0_1 = arith.constant 0 : index
    %c0_2 = arith.constant 0 : index
    %c0_3 = arith.constant 0 : index
    %1 = vector.load %arg2[%c0_1, %c0_2, %c0_3] : memref<1x4x256xf32, #tpu.memory_space<vmem>>, vector<1x4x256xf32>
    %2 = vector.shape_cast %1 : vector<1x4x256xf32> to vector<4x256xf32>
    %cst = arith.constant dense<0.000000e+00> : vector<8x256xf32>
    %3 = tpu.matmul %0, %2, %cst {dimension_numbers = #tpu.dot_dimension_numbers<[1], [0], [0], [1], [0, 0, 1, 1], [], []>} : vector<8x4xf32>, vector<4x256xf32>, vector<8x256xf32> -> vector<8x256xf32>
    %c0_4 = arith.constant 0 : index
    %c0_5 = arith.constant 0 : index
    %4 = vector.load %arg4[%c0_4, %c0_5] : memref<8x1xf32, #tpu.memory_space<vmem>>, vector<8x1xf32>
    %5 = vector.broadcast %4 : vector<8x1xf32> to vector<8x256xf32>
    %6 = arith.addf %3, %5 : vector<8x256xf32>
    %c0_6 = arith.constant 0 : index
    %c0_7 = arith.constant 0 : index
    %c0_8 = arith.constant 0 : index
    %7 = vector.load %arg5[%c0_6, %c0_7, %c0_8] : memref<1x8x256xf32, #tpu.memory_space<vmem>>, vector<1x8x256xf32>
    %8 = vector.shape_cast %7 : vector<1x8x256xf32> to vector<8x256xf32>
    %9 = vector.shape_cast %6 : vector<8x256xf32> to vector<1x8x256xf32>
    tpu.vector_store %arg5[%c0_6, %c0_7, %c0_8], %9 {strides = array<i32>} : memref<1x8x256xf32, #tpu.memory_space<vmem>>, vector<1x8x256xf32>,
    return
  }
  func.func @transform_0(%arg0: i32, %arg1: i32) -> (i32, i32, i32) {
    %c0_i32 = arith.constant 0 : i32
    %c0_i32_0 = arith.constant 0 : i32
    return %arg0, %c0_i32, %arg1 : i32, i32, i32
  }
  func.func @transform_1(%arg0: i32, %arg1: i32) -> (i32, i32) {
    %c0_i32 = arith.constant 0 : i32
    %c0_i32_0 = arith.constant 0 : i32
    %c0_i32_1 = arith.constant 0 : i32
    return %c0_i32, %c0_i32_0 : i32, i32
  }
  func.func @transform_2(%arg0: i32, %arg1: i32) -> (i32, i32) {
    %c0_i32 = arith.constant 0 : i32
    %c0_i32_0 = arith.constant 0 : i32
    %c0_i32_1 = arith.constant 0 : i32
    return %c0_i32, %c0_i32_0 : i32, i32
  }
  func.func @transform_3(%arg0: i32, %arg1: i32) -> (i32, i32, i32) {
    %c0_i32 = arith.constant 0 : i32
    %c0_i32_0 = arith.constant 0 : i32
    return %arg0, %c0_i32, %arg1 : i32, i32, i32
  }
}

</mosaic_0001>

<bundles_post_ra>
// kernel: linear_nchw.1
= control target key start
LH: loop header
LB: loop body
LE: loop exit
PB: predicated region body
PF: predicated region fallthrough
CT: control target
= control target key end

     0   :  { %s479_s12 = smov 0   ;;  %s481_s13 = smov 0   ;;  %s518_s0 = inlined_call_operand.vmem [shape: f32[2,4,256], index: 0, kind: input, shape index: {}]   ;;  %s519_s1 = inlined_call_operand.vmem [shape: f32[8,4], index: 1, kind: input, shape index: {}]   ;;  %s520_s2 = inlined_call_operand.vmem [shape: f32[8,1], index: 2, kind: input, shape index: {}]   ;;  %s521_s3 = inlined_call_operand.vmem [shape: f32[2,8,256], index: 3, kind: output, shape index: {}]  }
   0x1   :  { %s483_s14 = smov 0  }
   0x2 LB: > { %s25_s15 = sadd.s32 1, %s451_s13  ;;  %p393_p0 = scmp.ge.s32.totalorder %s455_s14, 1  ;;  %s455_s14 = sphi %s483_s14, %s13_s14   ;;  %s451_s13 = sphi %s481_s13, %s523_s13   ;;  %s447_s12 = sphi %s479_s12, %s522_s12  }
   0x3   : > { %p27_p1 = scmp.ge.s32.totalorder %s25_s15, 2  ;;  %p158_p2 = scmp.lt.s32.totalorder %s455_s14, 3 }
   0x5   : > { %s525_s15 = smov (%p27_p1, %s25_s15), 0  ;;  %p159_p3 = pnand %p393_p0, %p158_p2 }
   0x6   : > { %p191_p4 = scmp.lt.s32.totalorder (!%p159_p3), %s447_s12, 1 }
   0x7   : > { %162 = sbr.rel (%p159_p3) target bundleno = 218 (0xda), region = 32 }
   0xc   : > { %v457_v0 = vmov 0.0   ;;  %v458_v1 = vmov 0   ;;  %v212_v2 = vld [vmem:[%s520_s2] sm:$0xff]  ;;  %s527_s12 = smov (!%p191_p4, %s447_s12), 1  ;;  %vm224_vm0 = vcmask 1043456   ;;  %vm220_vm1 = vcmask 31744  }
   0xd   : > { %293 = vmatprep.mubr.f32.mxu0 %v457_v0  ;;  %431 = vset.pattern.permute.xlu0 %v458_v1  ;;  %s403_s18 = sshll.u32 %s527_s12, 3  ;;  %v210_v5 = vld [vmem:[%s519_s1] sm:$0xff]  ;;  %s404_s24 = sshll.u32 %s527_s12, 4 }
   0xe   : > { %215 = vperm.xlu0 %431, %v212_v2   ;;  %s198_s21 = scalar_lea.vmem %s518_s0, %s403_s18  ;;  %s208_s27 = scalar_lea.vmem %s521_s3, %s404_s24 }
   0xf   : > { %v211_v3 = vld [vmem:[%s198_s21] sm:$0xff] }
  0x10   : > { %v219_v4 = vcombine.high %v211_v3, %v211_v3 }
  0x12   : > { %398 = vmatprep.subr.msk.mxu0 %vm224_vm0, %v219_v4 }
  0x13   : > { %399 = vmatpush1.msk.msra.mxu0 %vm224_vm0, %v211_v3 }
  0x14   : > { %400 = vmatmul.mubr.msk.f32.vlgmr.msra.gmra.mxu0 %vm220_vm1, %v210_v5 }
  0x89   : > { %v216_v6 = vpop.permute.xlu0 %215 }
  0xd4   : > { %v295_v7 = vpop.f32.mrf.mxu0 }
  0xd5   : > { %v296_v8 = vadd.f32 %v295_v7, %v216_v6 }
  0xd6   : > { %v297_v9 = vpop.f32.mrf.mxu0 }
  0xd7   : > { %300 = vst [vmem:[%s208_s27] sm:$0xff] %v296_v8  ;;  %v298_v10 = vadd.f32 %v297_v9, %v216_v6 }
  0xd9   : > { %301 = vst [vmem:[%s208_s27 + $0x8] sm:$0xff] %v298_v10 }
  0xda PF: > { %s13_s14 = sadd.s32 1, %s455_s14   ;;  %s522_s12 = smov %s451_s13 }
  0xdb   : > { %p10_p5 = scmp.ge.s32.totalorder %s13_s14, 4   ;;  %s523_s13 = smov %s525_s15 }
  0xdd   :  { %12 = sbr.rel (!%p10_p5) target bundleno = 2 (0x2), region = 62 }

</bundles_post_ra>
